<compile_context>
chip_gen: v7x
topology: tpu7x:2x2x1
jax: 0.10.0
libtpu: 0.0.40
codegen_flags: <defaults>
</compile_context>

<pallas_src>
import jax
import jax.numpy as jnp
from jax import lax
from jax.experimental import pallas as pl
from jax.experimental.pallas import tpu as pltpu


def _round_up(x: int, m: int) -> int:
    return (x + m - 1) // m * m


def _reduce_dim_kernel(x_ref, w_ref, b_ref, o_ref):
    # x_ref: (TM, Kp), w_ref: (Kp, Np), b_ref: (1, Np), o_ref: (TM, Np)
    # Matmul in native input dtype, f32 accumulation on the MXU.
    y = jnp.dot(x_ref[...], w_ref[...], preferred_element_type=jnp.float32)
    y = y + b_ref[...].astype(jnp.float32)

    # F.normalize(y, dim=-1): y / max(||y||_2, 1e-12)
    #   == y * rsqrt(max(||y||^2, 1e-24))  (EUP rsqrt + vmul epilogue)
    sq = jnp.sum(y * y, axis=-1, keepdims=True)
    inv = lax.rsqrt(jnp.maximum(sq, 1e-24))
    o_ref[...] = (y * inv).astype(o_ref.dtype)


def reduce_dim(x, weight, bias, *, tm: int = 256):
    """x: (..., K); weight: (N, K) [nn.Linear layout]; bias: (N,) -> (..., N)."""
    *lead, K = x.shape
    N = weight.shape[0]
    M = 1
    for d in lead:
        M *= d

    # Padded problem sizes: lanes (last dims) to 128, row tile to 8.
    Kp = _round_up(K, 128)
    Np = _round_up(N, 128)
    tm_eff = min(tm, _round_up(M, 8))           # multiple of 8
    Mp = _round_up(M, tm_eff)

    # Zero-pad operands (exact: padded outputs are 0, norm unchanged).
    x2d = x.reshape(M, K)
    x2d = jnp.pad(x2d, ((0, Mp - M), (0, Kp - K)))
    w_kn = jnp.pad(weight.T, ((0, Kp - K), (0, Np - N)))       # (Kp, Np)
    b2d = jnp.pad(bias.reshape(1, N), ((0, 0), (0, Np - N)))   # (1, Np)

    # VMEM budget: double-buffered x/out tiles + resident weight + bias.
    bpe_x = jnp.dtype(x.dtype).itemsize
    bpe_w = jnp.dtype(weight.dtype).itemsize
    vmem_need = (
        2 * tm_eff * Kp * bpe_x          # x tile (double-buffered)
        + 2 * tm_eff * Np * bpe_x        # out tile (double-buffered)
        + 2 * Kp * Np * bpe_w            # resident weight
        + 2 * Np * 4                     # bias
    )
    vmem_limit = int(min(max(2 * vmem_need, 16 * 1024 * 1024),
                         48 * 1024 * 1024))

    out = pl.pallas_call(
        _reduce_dim_kernel,
        out_shape=jax.ShapeDtypeStruct((Mp, Np), x.dtype),
        grid_spec=pltpu.PrefetchScalarGridSpec(
            num_scalar_prefetch=0,
            grid=(Mp // tm_eff,),
            in_specs=[
                pl.BlockSpec((tm_eff, Kp), lambda i: (i, 0)),
                pl.BlockSpec((Kp, Np), lambda i: (0, 0)),   # VMEM-resident
                pl.BlockSpec((1, Np), lambda i: (0, 0)),    # VMEM-resident
            ],
            out_specs=pl.BlockSpec((tm_eff, Np), lambda i: (i, 0)),
        ),
        compiler_params=pltpu.CompilerParams(
            dimension_semantics=("parallel",),
            vmem_limit_bytes=vmem_limit,
        ),
    )(x2d, w_kn, b2d)

    return out[:M, :N].reshape(*lead, N)


if __name__ == "__main__":
    key = jax.random.PRNGKey(0)
    k_x, k_w, k_b = jax.random.split(key, 3)

    # Small shapes: batch=2, seq=8, input_dim=32, output_dim=16
    B, S, K, N = 2, 8, 32, 16

    x = jax.random.normal(k_x, (B, S, K), dtype=jnp.float32)

    # Deterministic nn.Linear-style init: U(-1/sqrt(K), 1/sqrt(K))
    bound = 1.0 / (K ** 0.5)
    weight = jax.random.uniform(k_w, (N, K), minval=-bound, maxval=bound,
                                dtype=jnp.float32)
    bias = jax.random.uniform(k_b, (N,), minval=-bound, maxval=bound,
                              dtype=jnp.float32)

    y = reduce_dim(x, weight, bias)
    jax.block_until_ready(y)

    # Reference check in plain JAX (same semantics as fc + F.normalize).
    y_ref = x @ weight.T + bias
    y_ref = y_ref / jnp.maximum(
        jnp.linalg.norm(y_ref, axis=-1, keepdims=True), 1e-12)
    assert y.shape == (B, S, N)
    assert jnp.allclose(y, y_ref, atol=1e-5, rtol=1e-5)

    print("KERNEL_OK")
</pallas_src>

<mosaic_0001>
module attributes {stable_mosaic.version = 11 : i64} {
  func.func @_reduce_dim_kernel(%arg0: i32, %arg1: memref<16x128xf32, #tpu.memory_space<vmem>>, %arg2: memref<128x128xf32, #tpu.memory_space<vmem>>, %arg3: memref<1x128xf32, #tpu.memory_space<vmem>>, %arg4: memref<16x128xf32, #tpu.memory_space<vmem>>) attributes {dimension_semantics = [#tpu.dimension_semantics<parallel>], iteration_bounds = array<i64: 1>, scalar_prefetch = 0 : i64, scratch_operands = 0 : i64, tpu.core_type = #tpu.core_type<tc>, window_params = [{transform_indices = @transform_0, window_bounds = array<i64: 16, 128>}, {pipeline_mode = #tpu.pipeline_mode<synchronous>, transform_indices = @transform_1, window_bounds = array<i64: 128, 128>}, {pipeline_mode = #tpu.pipeline_mode<synchronous>, transform_indices = @transform_2, window_bounds = array<i64: 1, 128>}, {transform_indices = @transform_3, window_bounds = array<i64: 16, 128>}]} {
    %c0 = arith.constant 0 : index
    %c0_0 = arith.constant 0 : index
    %0 = vector.load %arg1[%c0, %c0_0] : memref<16x128xf32, #tpu.memory_space<vmem>>, vector<16x128xf32>
    %c0_1 = arith.constant 0 : index
    %c0_2 = arith.constant 0 : index
    %1 = vector.load %arg2[%c0_1, %c0_2] : memref<128x128xf32, #tpu.memory_space<vmem>>, vector<128x128xf32>
    %cst = arith.constant dense<0.000000e+00> : vector<16x128xf32>
    %2 = tpu.matmul %0, %1, %cst {dimension_numbers = #tpu.dot_dimension_numbers<[1], [0], [0], [1], [0, 0, 1, 1], [], []>} : vector<16x128xf32>, vector<128x128xf32>, vector<16x128xf32> -> vector<16x128xf32>
    %c0_3 = arith.constant 0 : index
    %c0_4 = arith.constant 0 : index
    %3 = vector.load %arg3[%c0_3, %c0_4] : memref<1x128xf32, #tpu.memory_space<vmem>>, vector<1x128xf32>
    %4 = vector.broadcast %3 : vector<1x128xf32> to vector<16x128xf32>
    %5 = arith.addf %2, %4 : vector<16x128xf32>
    %6 = arith.mulf %5, %5 : vector<16x128xf32>
    %cst_5 = arith.constant dense<0.000000e+00> : vector<16xf32>
    %7 = vector.multi_reduction <add>, %6, %cst_5 [1] : vector<16x128xf32> to vector<16xf32>
    %8 = vector.shape_cast %7 : vector<16xf32> to vector<16x1xf32>
    %cst_6 = arith.constant 1.000000e-24 : f32
    %9 = vector.broadcast %cst_6 : f32 to vector<16x1xf32>
    %10 = arith.maximumf %8, %9 : vector<16x1xf32>
    %11 = math.rsqrt %10 : vector<16x1xf32>
    %12 = vector.broadcast %11 : vector<16x1xf32> to vector<16x128xf32>
    %13 = arith.mulf %5, %12 : vector<16x128xf32>
    %c0_7 = arith.constant 0 : index
    %c0_8 = arith.constant 0 : index
    %14 = vector.load %arg4[%c0_7, %c0_8] : memref<16x128xf32, #tpu.memory_space<vmem>>, vector<16x128xf32>
    tpu.vector_store %arg4[%c0_7, %c0_8], %13 {strides = array<i32>} : memref<16x128xf32, #tpu.memory_space<vmem>>, vector<16x128xf32>,
    return
  }
  func.func @transform_0(%arg0: i32) -> (i32, i32) {
    %c0_i32 = arith.constant 0 : i32
    %c0_i32_0 = arith.constant 0 : i32
    return %arg0, %c0_i32 : i32, i32
  }
  func.func @transform_1(%arg0: i32) -> (i32, i32) {
    %c0_i32 = arith.constant 0 : i32
    %c0_i32_0 = arith.constant 0 : i32
    %c0_i32_1 = arith.constant 0 : i32
    return %c0_i32, %c0_i32_0 : i32, i32
  }
  func.func @transform_2(%arg0: i32) -> (i32, i32) {
    %c0_i32 = arith.constant 0 : i32
    %c0_i32_0 = arith.constant 0 : i32
    %c0_i32_1 = arith.constant 0 : i32
    return %c0_i32, %c0_i32_0 : i32, i32
  }
  func.func @transform_3(%arg0: i32) -> (i32, i32) {
    %c0_i32 = arith.constant 0 : i32
    %c0_i32_0 = arith.constant 0 : i32
    return %arg0, %c0_i32 : i32, i32
  }
}

</mosaic_0001>

<bundles_post_ra>
// kernel: tpu_custom_call.1
= control target key start
LH: loop header
LB: loop body
LE: loop exit
PB: predicated region body
PF: predicated region fallthrough
CT: control target
= control target key end

     0   :  { %8 = vsyncpa [#allocation3], 0  ;;  %s415_s0 = inlined_call_operand.hbm [shape: f32[16,128], index: 0, kind: input, shape index: {}]   ;;  %s416_s1 = inlined_call_operand.hbm [shape: f32[128,128], index: 1, kind: input, shape index: {}]   ;;  %s417_s2 = inlined_call_operand.vmem [shape: f32[1,128], index: 2, kind: input, shape index: {}]   ;;  %s418_s3 = inlined_call_operand.hbm [shape: f32[16,128], index: 3, kind: output, shape index: {}]  }
   0x1   :  { %9 = vsyncpa [#allocation6], 0 }
   0x2   :  { %10 = vsyncpa [#allocation4], 0  ;;  %s342_s12 = smov [#allocation2]   ;;  %s270_s16 = scalar_lea.hbm %s415_s0, 256 }
   0x3   :  { %s16_s13 = sshll.u32 %s342_s12, 4  ;;  %p271_p0 = scmp.ne.s32.totalorder %s415_s0, %s270_s16  ;;  %s17_s13 = int_to_ptr.vmem [resolvable:$true] %s16_s13 }
   0x4   :  { %p274_p1 = scmp.lt.u32.totalorder %s270_s16, %s415_s0 }
   0x6   :  { %p276_p2 = pnand %p274_p1, %p271_p0 }
   0x8   :  { %279 = shalt.err (!%p276_p2)
}
   0x9   :  { %s280_s21 = scalar_lea.vmem %s17_s13, 256  ;;  %p285_p4 = scmp.lt.s32.totalorder %s17_s13, %s17_s13 }
   0xa   :  { %p281_p3 = scmp.ne.s32.totalorder %s17_s13, %s280_s21  ;;  %p286_p5 = scmp.lt.s32.totalorder %s280_s21, %s280_s21 }
   0xc   :  { %p287_p6 = por %p286_p5, %p285_p4 }
   0xe   :  { %p288_p7 = pnand %p287_p6, %p281_p3 }
  0x10   :  { %291 = shalt.err (!%p288_p7)
}
  0x11   :  { %s343_s22 = smov 128   ;;  %s344_s23 = smov 8  }
  0x12   :  { %22 = dma.hbm_to_vmem [thread:$0]  %s415_s0, 256, %s17_s13, [#allocation3], %s343_s22, %s343_s22, %s344_s23  }
  0x13   :  { %s345_s26 = smov [#allocation5]   ;;  %s292_s30 = scalar_lea.hbm %s416_s1, 2048 }
  0x14   :  { %s28_s27 = sshll.u32 %s345_s26, 4  ;;  %p293_p8 = scmp.ne.s32.totalorder %s416_s1, %s292_s30  ;;  %s29_s27 = int_to_ptr.vmem [resolvable:$true] %s28_s27 }
  0x15   :  { %p296_p9 = scmp.lt.u32.totalorder %s292_s30, %s416_s1 }
  0x17   :  { %p298_p10 = pnand %p296_p9, %p293_p8 }
  0x19   :  { %301 = shalt.err (!%p298_p10)
}
  0x1a   :  { %s302_s8 = scalar_lea.vmem %s29_s27, 2048  ;;  %p307_p12 = scmp.lt.s32.totalorder %s29_s27, %s29_s27 }
  0x1b   :  { %p303_p11 = scmp.ne.s32.totalorder %s29_s27, %s302_s8  ;;  %p308_p13 = scmp.lt.s32.totalorder %s302_s8, %s302_s8 }
  0x1d   :  { %p309_p0 = por %p308_p13, %p307_p12 }
  0x1f   :  { %p310_p1 = pnand %p309_p0, %p303_p11 }
  0x21   :  { %313 = shalt.err (!%p310_p1)
}
  0x22   :  { %34 = dma.hbm_to_vmem [thread:$0]  %s416_s1, 2048, %s29_s27, [#allocation6], %s343_s22, %s343_s22, %s344_s23  }
  0x23   :  { %336 = dma.done.wait [#allocation3], 256  }
  0x24   :  { %337 = vsyncadd [#allocation3], 4294967040 }
  0x25   :  { %338 = dma.done.wait [#allocation6], 2048  }
  0x26   :  { %339 = vsyncadd [#allocation6], 4294965248  ;;  %v45_v0 = vld [vmem:[#allocation5] sm:$0xff]  ;;  %v46_v1 = vld [vmem:[#allocation5 + $0x8] sm:$0xff]  ;;  %s346_s11 = smov [#allocation7]  }
  0x27   :  { %v47_v2 = vld [vmem:[#allocation5 + $0x10] sm:$0xff]  ;;  %v229_v3 = vpack.c.bf16 %v46_v1, %v45_v0  ;;  %v48_v4 = vld [vmem:[#allocation5 + $0x18] sm:$0xff]  ;;  %v49_v6 = vld [vmem:[#allocation5 + $0x20] sm:$0xff]  ;;  %s162_s12 = sshll.u32 %s346_s11, 4  ;;  %s163_s12 = int_to_ptr.vmem [resolvable:$true] %s162_s12 }
  0x28   :  { %v233_v5 = vpack.c.bf16 %v48_v4, %v47_v2  ;;  %v50_v7 = vld [vmem:[#allocation5 + $0x28] sm:$0xff]  ;;  %v43_v9 = vld [vmem:[#allocation2] sm:$0xff]  ;;  %v52_v11 = vld [vmem:[#allocation5 + $0x38] sm:$0xff]  ;;  %p319_p3 = scmp.lt.s32.totalorder %s163_s12, %s163_s12 }
  0x29   :  { %230 = vmatprep.subr.bf16.mxu0 %v229_v3  ;;  %v237_v8 = vpack.c.bf16 %v50_v7, %v49_v6  ;;  %v51_v10 = vld [vmem:[#allocation5 + $0x30] sm:$0xff]  ;;  %226 = vmatprep.mubr.f32.mxu0 %v43_v9  ;;  %v53_v13 = vld [vmem:[#allocation5 + $0x40] sm:$0xff]  ;;  %v54_v14 = vld [vmem:[#allocation5 + $0x48] sm:$0xff] }
  0x2a   :  { %232 = vmatpush3.bf16.msra.mxu0 %v229_v3  ;;  %v241_v12 = vpack.c.bf16 %v52_v11, %v51_v10  ;;  %v245_v15 = vpack.c.bf16 %v54_v14, %v53_v13  ;;  %v55_v16 = vld [vmem:[#allocation5 + $0x50] sm:$0xff]  ;;  %v56_v17 = vld [vmem:[#allocation5 + $0x58] sm:$0xff]  ;;  %v57_v19 = vld [vmem:[#allocation5 + $0x60] sm:$0xff] }
  0x2b   :  { %234 = vmatprep.subr.bf16.mxu0 %v233_v5  ;;  %v249_v18 = vpack.c.bf16 %v56_v17, %v55_v16  ;;  %v58_v20 = vld [vmem:[#allocation5 + $0x68] sm:$0xff]  ;;  %v59_v22 = vld [vmem:[#allocation5 + $0x70] sm:$0xff]  ;;  %v60_v23 = vld [vmem:[#allocation5 + $0x78] sm:$0xff] }
  0x2c   :  { %v253_v21 = vpack.c.bf16 %v58_v20, %v57_v19  ;;  %v257_v24 = vpack.c.bf16 %v60_v23, %v59_v22  ;;  %v44_v25 = vld [vmem:[#allocation2 + $0x8] sm:$0xff]  ;;  %v175_v26 = vld [vmem:[%s417_s2] ss:$0 sm:$0xff]  ;;  %s314_s2 = scalar_lea.vmem %s163_s12, 256 }
  0x2d   :  { %p315_p2 = scmp.ne.s32.totalorder %s163_s12, %s314_s2  ;;  %p320_p4 = scmp.lt.s32.totalorder %s314_s2, %s314_s2 }
  0x2e   :  { %236 = vmatpush3.bf16.msra.mxu0 %v233_v5 }
  0x2f   :  { %238 = vmatprep.subr.bf16.mxu0 %v237_v8  ;;  %p321_p5 = por %p320_p4, %p319_p3 }
  0x31   :  { %p322_p6 = pnand %p321_p5, %p315_p2 }
  0x32   :  { %240 = vmatpush3.bf16.msra.mxu0 %v237_v8 }
  0x33   :  { %242 = vmatprep.subr.bf16.mxu0 %v241_v12 }
  0x36   :  { %244 = vmatpush3.bf16.msra.mxu0 %v241_v12 }
  0x37   :  { %246 = vmatprep.subr.bf16.mxu0 %v245_v15 }
  0x3a   :  { %248 = vmatpush3.bf16.msra.mxu0 %v245_v15 }
  0x3b   :  { %250 = vmatprep.subr.bf16.mxu0 %v249_v18 }
  0x3e   :  { %252 = vmatpush3.bf16.msra.mxu0 %v249_v18 }
  0x3f   :  { %254 = vmatprep.subr.bf16.mxu0 %v253_v21 }
  0x42   :  { %256 = vmatpush3.bf16.msra.mxu0 %v253_v21 }
  0x43   :  { %258 = vmatprep.subr.bf16.mxu0 %v257_v24 }
  0x46   :  { %260 = vmatpush3.bf16.msra.mxu0 %v257_v24 }
  0x49   :  { %227 = vmatmul.mubr.f32.vlgmr.msra.gmra.mrb[0].mxu0 %v44_v25 }
 0x11c   :  { %v228_v27 = vpop.f32.mrb[0].mxu0 }
 0x11d   :  { %v134_v28 = vpop.f32.mrb[1].mxu0  ;;  %v140_v30 = vadd.f32 %v228_v27, %v175_v26 }
 0x11e   :  { %v135_v29 = vadd.f32 %v175_v26, %v134_v28 }
 0x11f   :  { %v144_v32 = vmul.f32 %v140_v30, %v140_v30 }
 0x120   :  { %v143_v31 = vmul.f32 %v135_v29, %v135_v29 }
 0x122   :  { %145 = vadd.xlane.f32.xlu0 %v143_v31 }
 0x126   :  { %147 = vadd.xlane.f32.xlu0 %v144_v32 }
 0x1af   :  { %v146_v33 = vpop.xlane.xlu0 %145 }
 0x1b0   :  { %v149_v34 = vmax.f32 %v146_v33, 1e-24 }
 0x1b2   :  { %266 = vrsqrt.f32 %v149_v34 }
 0x1b3   :  { %v148_v35 = vpop.xlane.xlu0 %147 }
 0x1b4   :  { %v150_v36 = vmax.f32 %v148_v35, 1e-24 }
 0x1b6   :  { %268 = vrsqrt.f32 %v150_v36 }
 0x1bc   :  { %v267_v37 = vpop.eup %266 }
 0x1bd   :  { %v153_v38 = vmul.f32 %v267_v37, %v135_v29 }
 0x1bf   :  { %155 = vst [vmem:[#allocation7] sm:$0xff] %v153_v38 }
 0x1c0   :  { %v269_v39 = vpop.eup %268 }
 0x1c1   :  { %v154_v40 = vmul.f32 %v269_v39, %v140_v30 }
 0x1c3   :  { %156 = vst [vmem:[#allocation7 + $0x8] sm:$0xff] %v154_v40 }
 0x1c4   :  { %325 = shalt.err (!%p322_p6)
}
 0x1c5   :  { %s326_s15 = scalar_lea.hbm %s418_s3, 256 }
 0x1c6   :  { %p327_p7 = scmp.ne.s32.totalorder %s418_s3, %s326_s15  ;;  %p330_p8 = scmp.lt.u32.totalorder %s326_s15, %s418_s3 }
 0x1c8   :  { %p332_p9 = pnand %p330_p8, %p327_p7 }
 0x1ca   :  { %335 = shalt.err (!%p332_p9)
}
 0x1cb   :  { %168 = dma.vmem_to_hbm [thread:$0]  %s163_s12, 256, %s418_s3, [#allocation4], %s343_s22, %s343_s22, %s344_s23  }
 0x1cc   :  { %340 = dma.done.wait [#allocation4], 256  }
 0x1cd   :  { %341 = vsyncadd [#allocation4], 4294967040 }
 0x1ce   :  { %172 = vsyncpa [#allocation3], 1 }
 0x1cf   :  { %173 = vsyncpa [#allocation6], 1 }
 0x1d0   :  { %174 = vsyncpa [#allocation4], 1 }

</bundles_post_ra>
